<compile_context>
chip_gen: v6e
topology: v6e:2x2x1
jax: 0.10.0
libtpu: 0.0.40
codegen_flags: <defaults>
</compile_context>

<pallas_src>
import functools

import jax
import jax.numpy as jnp
from jax.experimental import pallas as pl
from jax.experimental.pallas import tpu as pltpu


LANES = 128
DEFAULT_MAX_TILE_ROWS = 8192   # (8192, 128) f32 block = 4 MiB per input per buffer
V5E_MAX_TILE_ROWS = 4096       # v5e scoped-VMEM default is smaller


def _max_tile_rows_for_device():
    try:
        kind = jax.devices()[0].device_kind.lower()
    except Exception:
        return DEFAULT_MAX_TILE_ROWS
    if "v5 lite" in kind or "v5e" in kind or "v5litepod" in kind:
        return V5E_MAX_TILE_ROWS
    return DEFAULT_MAX_TILE_ROWS


def _static_pow(x, gamma):
    """x ** gamma, using repeated multiplies when gamma is a small integer."""
    g = float(gamma)
    if g.is_integer() and 0.0 <= g <= 4.0:
        gi = int(g)
        if gi == 0:
            return jnp.ones_like(x)
        r = x
        for _ in range(gi - 1):
            r = r * x
        return r
    return jnp.power(x, g)


def _loss_and_pos(p, t, alpha, gamma, epsilon, valid=None):
    """Fused per-element focal loss and positive indicator (both f32).

    One transcendental (log) per element; the sign is folded into the selected
    weight.  `valid` (optional bool mask) gates both the loss contribution and
    the positive count, so masked elements contribute exactly zero even if the
    underlying (out-of-range) data is garbage/NaN.
    """
    p = p.astype(jnp.float32)
    t = t.astype(jnp.float32)
    pos = t == 1.0            # positive_index
    contrib = t <= 1.0        # positive_index | negative_index
    if valid is not None:
        pos = jnp.logical_and(pos, valid)
        contrib = jnp.logical_and(contrib, valid)
    pc = jnp.clip(p, epsilon, 1.0 - epsilon)
    #   positive: w=-alpha,      prob=pc,     base=1-pc
    #   negative: w=-(1-alpha),  prob=1-pc,   base=pc
    prob = jnp.where(pos, pc, 1.0 - pc)
    base = 1.0 - prob
    w = jnp.where(pos, jnp.float32(-alpha), jnp.float32(alpha - 1.0))
    loss = jnp.where(contrib, w * _static_pow(base, gamma) * jnp.log(prob),
                     jnp.float32(0.0))
    return loss, pos.astype(jnp.float32)


def _focal_kernel(pred_ref, tgt_ref, out_ref, *, alpha, gamma, epsilon,
                  group, tile_rows, total_rows):
    n_groups = tile_rows // group
    unroll = min(max(1, 64 // group), max(n_groups, 1))
    zero = jnp.zeros((group, LANES), jnp.float32)
    ragged = (total_rows % tile_rows) != 0   # static: grid not evenly divided

    if not ragged:
        # Fast path: no per-element masking at all.
        def body(g, carry):
            lacc, pacc = carry
            r0 = pl.multiple_of(g * group, group)
            l, ps = _loss_and_pos(pred_ref[pl.ds(r0, group), :],
                                  tgt_ref[pl.ds(r0, group), :],
                                  alpha, gamma, epsilon)
            return lacc + l, pacc + ps

        lacc, pacc = jax.lax.fori_loop(0, n_groups, body, (zero, zero),
                                       unroll=unroll)

        # Only possible in the single-block case (tile_rows == total_rows):
        # handle the last (total_rows % group) rows with one masked group that
        # ends exactly at the array boundary (never reads out of bounds).
        rem = total_rows % group
        if rem != 0:
            base = total_rows - group          # static, >= 0 (wrapper guarantees)
            keep = (jax.lax.broadcasted_iota(jnp.int32, (group, LANES), 0)
                    >= (group - rem))          # drop rows already accumulated
            l, ps = _loss_and_pos(pred_ref[pl.ds(base, group), :],
                                  tgt_ref[pl.ds(base, group), :],
                                  alpha, gamma, epsilon, valid=keep)
            lacc = lacc + l
            pacc = pacc + ps
    else:
        # Ragged multi-block grid: keep the loop static (so it stays unrolled)
        # and fold a single global-row-bound compare into the selects.
        block_start = pl.program_id(0) * tile_rows
        row_iota = jax.lax.broadcasted_iota(jnp.int32, (group, LANES), 0)

        def body(g, carry):
            lacc, pacc = carry
            r0 = pl.multiple_of(g * group, group)
            keep = row_iota < (total_rows - (block_start + r0))
            l, ps = _loss_and_pos(pred_ref[pl.ds(r0, group), :],
                                  tgt_ref[pl.ds(r0, group), :],
                                  alpha, gamma, epsilon, valid=keep)
            return lacc + l, pacc + ps

        lacc, pacc = jax.lax.fori_loop(0, n_groups, body, (zero, zero),
                                       unroll=unroll)

    # Single merged writeback: loss partial stacked over positive-count partial.
    out_ref[...] = jnp.concatenate([lacc, pacc], axis=0).reshape(
        1, 2 * group, LANES)


def clamped_focal_loss(prediction, target, *, alpha=0.75, gamma=2.0,
                       epsilon=1e-4, max_tile_rows=None):
    """Pallas implementation of ClampedFocalLoss.forward. Returns scalar f32."""
    alpha = float(alpha)
    gamma = float(gamma)
    epsilon = float(epsilon)

    p = prediction.reshape(-1)
    t = target.reshape(-1)
    n = p.shape[0]

    # Sublane group: 8 rows/vreg for 4-byte dtypes, 16 for 2-byte, 32 for 1-byte
    # (keeps block shapes legal and loads packing-friendly for bf16/f16 inputs).
    group = max(8, 32 // p.dtype.itemsize, 32 // t.dtype.itemsize)

    total = jnp.float32(0.0)
    num_pos = jnp.float32(0.0)

    n_rows = n // LANES
    n_main = n_rows * LANES
    if n_rows < group:
        n_main = 0   # too small for the kernel; handled entirely below

    if n_main > 0:
        # When numel % 128 == 0 (typical NCHW heatmaps) these reshapes are pure
        # bitcasts — no HBM copy.  A prefix slice (copy) only happens for the
        # rare numel % 128 != 0 case.
        p_main = p if n_main == n else p[:n_main]
        t_main = t if n_main == n else t[:n_main]
        p2 = p_main.reshape(n_rows, LANES)
        t2 = t_main.reshape(n_rows, LANES)

        max_rows = (max_tile_rows if max_tile_rows is not None
                    else _max_tile_rows_for_device())
        if n_rows <= max_rows:
            tile_rows = n_rows                           # single full-dims block
        else:
            tile_rows = max(group, (max_rows // group) * group)
        num_blocks = pl.cdiv(n_rows, tile_rows)

        kernel = functools.partial(
            _focal_kernel, alpha=alpha, gamma=gamma, epsilon=epsilon,
            group=group, tile_rows=tile_rows, total_rows=n_rows)

        itemsize = max(p2.dtype.itemsize, t2.dtype.itemsize)
        buf_bytes = 2 * 2 * tile_rows * LANES * itemsize   # 2 inputs x 2 buffers
        in_bytes = n_main * (p2.dtype.itemsize + t2.dtype.itemsize)
        out_bytes = num_blocks * 2 * group * LANES * 4

        parts = pl.pallas_call(
            kernel,
            out_shape=jax.ShapeDtypeStruct((num_blocks, 2 * group, LANES),
                                           jnp.float32),
            grid=(num_blocks,),
            in_specs=[pl.BlockSpec((tile_rows, LANES), lambda i: (i, 0)),
                      pl.BlockSpec((tile_rows, LANES), lambda i: (i, 0))],
            out_specs=pl.BlockSpec((1, 2 * group, LANES), lambda i: (i, 0, 0)),
            compiler_params=pltpu.CompilerParams(
                dimension_semantics=("parallel",),
                vmem_limit_bytes=int(buf_bytes + (16 << 20)),
            ),
            cost_estimate=pl.CostEstimate(
                flops=16 * n_main,
                transcendentals=n_main,
                bytes_accessed=int(in_bytes + out_bytes)),
        )(p2, t2)

        total = jnp.sum(parts[:, :group, :])
        num_pos = jnp.sum(parts[:, group:, :])

    if n_main < n:
        # < group*128 element remainder: tiny plain-JAX epilogue (no pad copy).
        lt, pt = _loss_and_pos(p[n_main:], t[n_main:], alpha, gamma, epsilon)
        total = total + jnp.sum(lt)
        num_pos = num_pos + jnp.sum(pt)

    # num_positive == 0 -> negative_loss only (positive part is exactly 0 then).
    return jnp.where(num_pos == 0.0, total, total / num_pos)


def _reference_loss(prediction, target, *, alpha=0.75, gamma=2.0, epsilon=1e-4):
    """Pure-JAX reference matching the PyTorch module (math in f32)."""
    prediction = prediction.astype(jnp.float32)
    target = target.astype(jnp.float32)
    positive_index = (target == 1.0).astype(jnp.float32)
    negative_index = (target < 1.0).astype(jnp.float32)
    pc = jnp.clip(prediction, epsilon, 1.0 - epsilon)
    positive_loss = -alpha * jnp.power(1.0 - pc, gamma) * jnp.log(pc) * positive_index
    negative_loss = -(1.0 - alpha) * jnp.power(pc, gamma) * jnp.log(1.0 - pc) * negative_index
    num_positive = positive_index.sum()
    positive_loss = positive_loss.sum()
    negative_loss = negative_loss.sum()
    return jnp.where(
        num_positive == 0.0, negative_loss,
        (positive_loss + negative_loss) / num_positive)


def _make_inputs(key, shape, peak_frac=0.97):
    k_pred, k_heat, k_peak = jax.random.split(key, 3)
    prediction = jax.nn.sigmoid(jax.random.normal(k_pred, shape, jnp.float32))
    target = jax.random.uniform(k_heat, shape, jnp.float32, 0.0, 0.9)
    if peak_frac is not None:
        peaks = jax.random.uniform(k_peak, shape, jnp.float32) > peak_frac
        target = jnp.where(peaks, 1.0, target)
    return prediction, target


def _check(loss, ref, rtol=1e-5, atol=1e-5):
    assert jnp.allclose(loss, ref, rtol=rtol, atol=atol), (loss, ref)


if __name__ == "__main__":
    key = jax.random.PRNGKey(0)
    k0, k1, k2, k3 = jax.random.split(key, 4)

    # 1) Primary check: small NCHW shape consistent with a SMOKE heatmap head.
    pred, tgt = _make_inputs(k0, (2, 4, 16, 16))
    loss = jax.block_until_ready(clamped_focal_loss(pred, tgt))
    _check(loss, _reference_loss(pred, tgt))

    # 2) Single block with a sub-group row remainder (2500 rows, 2500 % 8 == 4).
    pred, tgt = _make_inputs(k1, (2, 4, 200, 200))
    loss = jax.block_until_ready(clamped_focal_loss(pred, tgt))
    _check(loss, _reference_loss(pred, tgt), rtol=5e-5)

    # 3) Ragged multi-block grid (forces the masked multi-block path).
    loss = jax.block_until_ready(clamped_focal_loss(pred, tgt, max_tile_rows=64))
    _check(loss, _reference_loss(pred, tgt), rtol=5e-5)

    # 4) Aligned multi-block grid (unmasked fast path, >1 grid step).
    pred, tgt = _make_inputs(k2, (2, 4, 64, 64))
    loss = jax.block_until_ready(clamped_focal_loss(pred, tgt, max_tile_rows=64))
    _check(loss, _reference_loss(pred, tgt), rtol=5e-5)

    # 5) bf16 inputs streamed at native width, cast to f32 in-kernel.
    pred_bf = pred.astype(jnp.bfloat16)
    tgt_bf = tgt.astype(jnp.bfloat16)
    loss = jax.block_until_ready(clamped_focal_loss(pred_bf, tgt_bf))
    _check(loss, _reference_loss(pred_bf, tgt_bf), rtol=5e-5)

    # 6) num_positive == 0 fallback (no peaks in the target heatmap).
    pred, tgt = _make_inputs(k3, (2, 4, 16, 16), peak_frac=None)
    loss = jax.block_until_ready(clamped_focal_loss(pred, tgt))
    _check(loss, _reference_loss(pred, tgt))

    print("KERNEL_OK")
</pallas_src>

<mosaic_0001>
module attributes {stable_mosaic.version = 11 : i64} {
  func.func @_focal_kernel(%arg0: i32, %arg1: memref<16x128xf32, #tpu.memory_space<vmem>>, %arg2: memref<16x128xf32, #tpu.memory_space<vmem>>, %arg3: memref<1x16x128xf32, #tpu.memory_space<vmem>>) attributes {dimension_semantics = [#tpu.dimension_semantics<parallel>], iteration_bounds = array<i64: 1>, scalar_prefetch = 0 : i64, scratch_operands = 0 : i64, tpu.core_type = #tpu.core_type<tc>, window_params = [{transform_indices = @transform_0, window_bounds = array<i64: 16, 128>}, {transform_indices = @transform_1, window_bounds = array<i64: 16, 128>}, {transform_indices = @transform_2, window_bounds = array<i64: 1, 16, 128>}]} {
    %cst = arith.constant 0.000000e+00 : f32
    %0 = vector.broadcast %cst : f32 to vector<8x128xf32>
    %c0_i32 = arith.constant 0 : i32
    %c8_i32 = arith.constant 8 : i32
    %1 = arith.muli %c0_i32, %c8_i32 : i32
    %2 = tpu.assume_multiple %1, 8 : i32
    %3 = arith.index_cast %2 : i32 to index
    %c0 = arith.constant 0 : index
    %4 = vector.load %arg1[%3, %c0] : memref<16x128xf32, #tpu.memory_space<vmem>>, vector<8x128xf32>
    %5 = arith.index_cast %2 : i32 to index
    %c0_0 = arith.constant 0 : index
    %6 = vector.load %arg2[%5, %c0_0] : memref<16x128xf32, #tpu.memory_space<vmem>>, vector<8x128xf32>
    %cst_1 = arith.constant 1.000000e+00 : f32
    %7 = vector.broadcast %cst_1 : f32 to vector<8x128xf32>
    %8 = arith.cmpf oeq, %6, %7 : vector<8x128xf32>
    %cst_2 = arith.constant 1.000000e+00 : f32
    %9 = vector.broadcast %cst_2 : f32 to vector<8x128xf32>
    %10 = arith.cmpf ole, %6, %9 : vector<8x128xf32>
    %cst_3 = arith.constant 9.99999974E-5 : f32
    %cst_4 = arith.constant 0.999899983 : f32
    %11 = vector.broadcast %cst_3 : f32 to vector<8x128xf32>
    %12 = arith.maximumf %11, %4 : vector<8x128xf32>
    %13 = vector.broadcast %cst_4 : f32 to vector<8x128xf32>
    %14 = arith.minimumf %13, %12 : vector<8x128xf32>
    %cst_5 = arith.constant 1.000000e+00 : f32
    %15 = vector.broadcast %cst_5 : f32 to vector<8x128xf32>
    %16 = arith.subf %15, %14 : vector<8x128xf32>
    %17 = arith.select %8, %14, %16 : vector<8x128xi1>, vector<8x128xf32>
    %cst_6 = arith.constant 1.000000e+00 : f32
    %18 = vector.broadcast %cst_6 : f32 to vector<8x128xf32>
    %19 = arith.subf %18, %17 : vector<8x128xf32>
    %cst_7 = arith.constant -7.500000e-01 : f32
    %cst_8 = arith.constant -2.500000e-01 : f32
    %20 = vector.broadcast %cst_7 : f32 to vector<8x128xf32>
    %21 = vector.broadcast %cst_8 : f32 to vector<8x128xf32>
    %22 = arith.select %8, %20, %21 : vector<8x128xi1>, vector<8x128xf32>
    %23 = arith.mulf %19, %19 : vector<8x128xf32>
    %24 = arith.mulf %22, %23 : vector<8x128xf32>
    %25 = math.log %17 : vector<8x128xf32>
    %26 = arith.mulf %24, %25 : vector<8x128xf32>
    %cst_9 = arith.constant 0.000000e+00 : f32
    %27 = vector.broadcast %cst_9 : f32 to vector<8x128xf32>
    %28 = arith.select %10, %26, %27 : vector<8x128xi1>, vector<8x128xf32>
    %29 = arith.extui %8 : vector<8x128xi1> to vector<8x128xi32>
    %30 = arith.sitofp %29 : vector<8x128xi32> to vector<8x128xf32>
    %31 = arith.addf %0, %28 : vector<8x128xf32>
    %32 = arith.addf %0, %30 : vector<8x128xf32>
    %c1_i32 = arith.constant 1 : i32
    %c8_i32_10 = arith.constant 8 : i32
    %33 = arith.muli %c1_i32, %c8_i32_10 : i32
    %34 = tpu.assume_multiple %33, 8 : i32
    %35 = arith.index_cast %34 : i32 to index
    %c0_11 = arith.constant 0 : index
    %36 = vector.load %arg1[%35, %c0_11] : memref<16x128xf32, #tpu.memory_space<vmem>>, vector<8x128xf32>
    %37 = arith.index_cast %34 : i32 to index
    %c0_12 = arith.constant 0 : index
    %38 = vector.load %arg2[%37, %c0_12] : memref<16x128xf32, #tpu.memory_space<vmem>>, vector<8x128xf32>
    %cst_13 = arith.constant 1.000000e+00 : f32
    %39 = vector.broadcast %cst_13 : f32 to vector<8x128xf32>
    %40 = arith.cmpf oeq, %38, %39 : vector<8x128xf32>
    %cst_14 = arith.constant 1.000000e+00 : f32
    %41 = vector.broadcast %cst_14 : f32 to vector<8x128xf32>
    %42 = arith.cmpf ole, %38, %41 : vector<8x128xf32>
    %cst_15 = arith.constant 9.99999974E-5 : f32
    %cst_16 = arith.constant 0.999899983 : f32
    %43 = vector.broadcast %cst_15 : f32 to vector<8x128xf32>
    %44 = arith.maximumf %43, %36 : vector<8x128xf32>
    %45 = vector.broadcast %cst_16 : f32 to vector<8x128xf32>
    %46 = arith.minimumf %45, %44 : vector<8x128xf32>
    %cst_17 = arith.constant 1.000000e+00 : f32
    %47 = vector.broadcast %cst_17 : f32 to vector<8x128xf32>
    %48 = arith.subf %47, %46 : vector<8x128xf32>
    %49 = arith.select %40, %46, %48 : vector<8x128xi1>, vector<8x128xf32>
    %cst_18 = arith.constant 1.000000e+00 : f32
    %50 = vector.broadcast %cst_18 : f32 to vector<8x128xf32>
    %51 = arith.subf %50, %49 : vector<8x128xf32>
    %cst_19 = arith.constant -7.500000e-01 : f32
    %cst_20 = arith.constant -2.500000e-01 : f32
    %52 = vector.broadcast %cst_19 : f32 to vector<8x128xf32>
    %53 = vector.broadcast %cst_20 : f32 to vector<8x128xf32>
    %54 = arith.select %40, %52, %53 : vector<8x128xi1>, vector<8x128xf32>
    %55 = arith.mulf %51, %51 : vector<8x128xf32>
    %56 = arith.mulf %54, %55 : vector<8x128xf32>
    %57 = math.log %49 : vector<8x128xf32>
    %58 = arith.mulf %56, %57 : vector<8x128xf32>
    %cst_21 = arith.constant 0.000000e+00 : f32
    %59 = vector.broadcast %cst_21 : f32 to vector<8x128xf32>
    %60 = arith.select %42, %58, %59 : vector<8x128xi1>, vector<8x128xf32>
    %61 = arith.extui %40 : vector<8x128xi1> to vector<8x128xi32>
    %62 = arith.sitofp %61 : vector<8x128xi32> to vector<8x128xf32>
    %63 = arith.addf %31, %60 : vector<8x128xf32>
    %64 = arith.addf %32, %62 : vector<8x128xf32>
    %c2_i32 = arith.constant 2 : i32
    %65 = tpu.concatenate %63, %64 in 0 : vector<8x128xf32>, vector<8x128xf32> -> vector<16x128xf32>
    %66 = vector.shape_cast %65 : vector<16x128xf32> to vector<1x16x128xf32>
    %c0_22 = arith.constant 0 : index
    %c0_23 = arith.constant 0 : index
    %c0_24 = arith.constant 0 : index
    %67 = vector.load %arg3[%c0_22, %c0_23, %c0_24] : memref<1x16x128xf32, #tpu.memory_space<vmem>>, vector<1x16x128xf32>
    tpu.vector_store %arg3[%c0_22, %c0_23, %c0_24], %66 {strides = array<i32>} : memref<1x16x128xf32, #tpu.memory_space<vmem>>, vector<1x16x128xf32>,
    return
  }
  func.func @transform_0(%arg0: i32) -> (i32, i32) {
    %c0_i32 = arith.constant 0 : i32
    %c0_i32_0 = arith.constant 0 : i32
    return %arg0, %c0_i32 : i32, i32
  }
  func.func @transform_1(%arg0: i32) -> (i32, i32) {
    %c0_i32 = arith.constant 0 : i32
    %c0_i32_0 = arith.constant 0 : i32
    return %arg0, %c0_i32 : i32, i32
  }
  func.func @transform_2(%arg0: i32) -> (i32, i32, i32) {
    %c0_i32 = arith.constant 0 : i32
    %c0_i32_0 = arith.constant 0 : i32
    %c0_i32_1 = arith.constant 0 : i32
    return %arg0, %c0_i32, %c0_i32_0 : i32, i32, i32
  }
}

</mosaic_0001>

<bundles_post_ra>
// kernel: tpu_custom_call.1
= control target key start
LH: loop header
LB: loop body
LE: loop exit
PB: predicated region body
PF: predicated region fallthrough
CT: control target
= control target key end

     0   :  { %7 = vsyncpa [#allocation3], 0  ;;  %s227_s0 = inlined_call_operand.hbm [shape: f32[16,128], index: 0, kind: input, shape index: {}]   ;;  %s228_s1 = inlined_call_operand.hbm [shape: f32[16,128], index: 1, kind: input, shape index: {}]   ;;  %s229_s2 = inlined_call_operand.hbm [shape: f32[1,16,128], index: 2, kind: output, shape index: {}]  }
   0x1   :  { %8 = vsyncpa [#allocation6], 0 }
   0x2   :  { %9 = vsyncpa [#allocation4], 0  ;;  %s181_s9 = smov [#allocation2]  }
   0x3   :  { %s15_s10 = sshll.u32 %s181_s9, 4  ;;  %s16_s10 = int_to_ptr.vmem [resolvable:$true] %s15_s10 }
   0x4   :  { %s123_s11 = scalar_lea.vmem %s16_s10, 256  ;;  %p128_p1 = scmp.lt.s32.totalorder %s16_s10, %s16_s10 }
   0x5   :  { %p124_p0 = scmp.ne.s32.totalorder %s16_s10, %s123_s11  ;;  %p129_p2 = scmp.lt.s32.totalorder %s123_s11, %s123_s11 }
   0x7   :  { %p130_p3 = por %p129_p2, %p128_p1 }
   0x9   :  { %p131_p4 = pnand %p130_p3, %p124_p0 }
   0xb   :  { %134 = shalt.err (!%p131_p4)
}
   0xc   :  { %s182_s12 = smov 128   ;;  %s183_s13 = smov 8  }
   0xd   :  { %21 = dma.hbm_to_vmem [thread:$0]  %s227_s0, 256, %s16_s10, [#allocation3], %s182_s12, %s182_s12, %s183_s13  }
   0xe   :  { %s184_s16 = smov [#allocation5]  }
   0xf   :  { %s27_s17 = sshll.u32 %s184_s16, 4  ;;  %s28_s17 = int_to_ptr.vmem [resolvable:$true] %s27_s17 }
  0x10   :  { %s143_s18 = scalar_lea.vmem %s28_s17, 256  ;;  %p148_p6 = scmp.lt.s32.totalorder %s28_s17, %s28_s17 }
  0x11   :  { %p144_p5 = scmp.ne.s32.totalorder %s28_s17, %s143_s18  ;;  %p149_p7 = scmp.lt.s32.totalorder %s143_s18, %s143_s18 }
  0x13   :  { %p150_p8 = por %p149_p7, %p148_p6 }
  0x15   :  { %p151_p9 = pnand %p150_p8, %p144_p5 }
  0x17   :  { %154 = shalt.err (!%p151_p9)
}
  0x18   :  { %33 = dma.hbm_to_vmem [thread:$0]  %s228_s1, 256, %s28_s17, [#allocation6], %s182_s12, %s182_s12, %s183_s13  }
  0x19   :  { %175 = dma.done.wait [#allocation3], 256  }
  0x1a   :  { %176 = vsyncadd [#allocation3], 4294967040 }
  0x1b   :  { %177 = dma.done.wait [#allocation6], 256  }
  0x1c   :  { %178 = vsyncadd [#allocation6], 4294967040  ;;  %v40_v0 = vld [vmem:[#allocation2] sm:$0xff]  ;;  %v41_v1 = vld [vmem:[#allocation5] sm:$0xff]  ;;  %v185_v7 = vmov 0.0   ;;  %v186_v19 = vmov -0.25  }
  0x1d   :  { %v61_v2 = vld [vmem:[#allocation2 + $0x8] sm:$0xff]  ;;  %v44_v3 = vmax.f32 %v40_v0, 0.0001  ;;  %v63_v4 = vld [vmem:[#allocation5 + $0x8] sm:$0xff]  ;;  %vm42_vm0 = vcmp.eq.f32.partialorder %v41_v1, 1.0  ;;  %vm43_vm2 = vcmp.le.f32.partialorder %v41_v1, 1.0 }
  0x1e   :  { %vm64_vm1 = vcmp.eq.f32.partialorder %v63_v4, 1.0  ;;  %v66_v5 = vmax.f32 %v61_v2, 0.0001  ;;  %v102_v8 = vsel %vm42_vm0, 1.0, %v185_v7  ;;  %v49_v20 = vsel %vm42_vm0, -0.75, %v186_v19  ;;  %s187_s0 = smov [#allocation7]  }
  0x1f   :  { %v45_v6 = vmin.f32 %v44_v3, 0.9999  ;;  %v103_v9 = vsel %vm64_vm1, 1.0, %v185_v7  ;;  %v71_v22 = vsel %vm64_vm1, -0.75, %v186_v19  ;;  %vm65_vm3 = vcmp.le.f32.partialorder %v63_v4, 1.0  ;;  %s89_s1 = sshll.u32 %s187_s0, 4  ;;  %s90_s1 = int_to_ptr.vmem [resolvable:$true] %s89_s1 }
  0x20   :  { %v67_v10 = vmin.f32 %v66_v5, 0.9999  ;;  %v81_v11 = vadd.f32 %v103_v9, %v102_v8  ;;  %s155_s21 = scalar_lea.vmem %s90_s1, 256  ;;  %p160_p11 = scmp.lt.s32.totalorder %s90_s1, %s90_s1 }
  0x21   :  { %v46_v12 = vsub.f32 1.0, %v45_v6  ;;  %p156_p10 = scmp.ne.s32.totalorder %s90_s1, %s155_s21  ;;  %p161_p12 = scmp.lt.s32.totalorder %s155_s21, %s155_s21 }
  0x22   :  { %v68_v13 = vsub.f32 1.0, %v67_v10  ;;  %83 = vst [vmem:[#allocation7 + $0x8] sm:$0xff] %v81_v11 }
  0x23   :  { %v47_v14 = vsel %vm42_vm0, %v45_v6, %v46_v12  ;;  %p162_p13 = por %p161_p12, %p160_p11 }
  0x24   :  { %111 = vlog2.f32 %v47_v14  ;;  %v69_v15 = vsel %vm64_vm1, %v67_v10, %v68_v13  ;;  %v48_v16 = vsub.f32 1.0, %v47_v14 }
  0x25   :  { %113 = vlog2.f32 %v69_v15  ;;  %v70_v17 = vsub.f32 1.0, %v69_v15  ;;  %p163_p0 = pnand %p162_p13, %p156_p10 }
  0x26   :  { %v50_v18 = vmul.f32 %v48_v16, %v48_v16 }
  0x27   :  { %v72_v21 = vmul.f32 %v70_v17, %v70_v17 }
  0x28   :  { %v51_v23 = vmul.f32 %v50_v18, %v49_v20 }
  0x29   :  { %v73_v25 = vmul.f32 %v72_v21, %v71_v22 }
  0x31   :  { %v112_v24 = vpop.eup %111 }
  0x32   :  { %v114_v26 = vpop.eup %113  ;;  %v53_v27 = vmul.f32 0.6931472, %v112_v24 }
  0x33   :  { %v75_v28 = vmul.f32 0.6931472, %v114_v26 }
  0x34   :  { %v54_v29 = vmul.f32 %v53_v27, %v51_v23 }
  0x35   :  { %v76_v30 = vmul.f32 %v75_v28, %v73_v25 }
  0x36   :  { %v55_v31 = vsel %vm43_vm2, %v54_v29, 0.0 }
  0x37   :  { %v77_v32 = vsel %vm65_vm3, %v76_v30, 0.0 }
  0x38   :  { %v80_v33 = vadd.f32 %v77_v32, %v55_v31 }
  0x3a   :  { %82 = vst [vmem:[#allocation7] sm:$0xff] %v80_v33 }
  0x3b   :  { %166 = shalt.err (!%p163_p0)
}
  0x3c   :  { %95 = dma.vmem_to_hbm [thread:$0]  %s90_s1, 256, %s229_s2, [#allocation4], %s182_s12, %s182_s12, %s183_s13  }
  0x3d   :  { %179 = dma.done.wait [#allocation4], 256  }
  0x3e   :  { %180 = vsyncadd [#allocation4], 4294967040 }
  0x3f   :  { %99 = vsyncpa [#allocation3], 1 }
  0x40   :  { %100 = vsyncpa [#allocation6], 1 }
  0x41   :  { %101 = vsyncpa [#allocation4], 1 }

</bundles_post_ra>
